<compile_context>
chip_gen: v7x
topology: tpu7x:2x2x1
jax: 0.10.0
libtpu: 0.0.40
codegen_flags: <defaults>
</compile_context>

<pallas_src>
import jax
import jax.numpy as jnp
from jax.experimental import pallas as pl
from jax.experimental.pallas import tpu as pltpu

_LANE = 128     # TPU lane width; batch lives on the lane axis
_TM_MAX = 1024  # max batch tile (footprint stays << VMEM on every generation)


def _mlp_kernel(xt_ref, w1c_ref, b1c_ref, w2t_ref, b2c_ref, w3c_ref, b3_ref,
                o_ref):
    # Batch-in-lanes layout: batch is the last (lane) axis of every tensor.
    xt = xt_ref[...]                                             # (1, TM)

    # ----- fc1 + ReLU -------------------------------------------------------
    # n_input == 1, so the contraction is an outer product: sublane-broadcast
    # multiply on the VPU, no MXU pass with a padded K=1 contraction.
    #   (H, 1) * (1, TM) + (H, 1) -> (H, TM)
    h1 = jnp.maximum(w1c_ref[...] * xt + b1c_ref[...], 0.0)

    # ----- fc2 + ReLU -------------------------------------------------------
    # Real (H x H) contraction on the MXU; output width is TM=128 lanes
    # (lane-dense) instead of 32.  Accumulate in f32.
    h2 = jnp.dot(w2t_ref[...], h1,
                 preferred_element_type=jnp.float32) + b2c_ref[...]
    h2 = jnp.maximum(h2, 0.0)                                    # (H, TM)

    # ----- fc3 --------------------------------------------------------------
    # n_output == 1: per-column dot product = VPU multiply + XLU sublane
    # reduction.  b3 is a scalar read from SMEM.
    out = jnp.sum(w3c_ref[...] * h2, axis=0, keepdims=True) + b3_ref[0]

    o_ref[...] = out.astype(o_ref.dtype)                         # (1, TM)


def regression_forward(x, w1, b1, w2, b2, w3, b3):
    """Fused MLP forward. x: (B, 1) float32 -> (B, 1) float32."""
    B, n_in = x.shape
    n_hidden = w1.shape[1]
    n_out = w3.shape[1]
    # Kernel is specialized to the shapes the original script uses.
    assert n_in == 1 and n_out == 1, "kernel specialized to n_input=1, n_output=1"

    # Batch tile: lane-aligned, grows with B (per-grid-step overhead dominates
    # small tiles); for the toy B=100 this is a single 128-lane tile.
    tm = min(pl.cdiv(B, _LANE) * _LANE, _TM_MAX)
    grid = (pl.cdiv(B, tm),)

    # Transposed operands (all free reshapes except the one-time (H,H) w2.T).
    x_t = x.reshape(1, B)            # batch -> lanes
    w1_c = w1.reshape(n_hidden, 1)   # (1,H) -> (H,1)
    b1_c = b1.reshape(n_hidden, 1)
    w2_t = w2.T                      # (H,H), transposed once outside the kernel
    b2_c = b2.reshape(n_hidden, 1)
    w3_c = w3.reshape(n_hidden, 1)   # already a column
    b3_s = b3.reshape(1)             # SMEM scalar

    def full_vmem(a):
        return pl.BlockSpec(a.shape, lambda i: (0, 0))

    out_t = pl.pallas_call(
        _mlp_kernel,
        out_shape=jax.ShapeDtypeStruct((1, B), jnp.float32),
        grid=grid,
        in_specs=[
            pl.BlockSpec((1, tm), lambda i: (0, i)),   # x^T, tiled over batch
            full_vmem(w1_c), full_vmem(b1_c),
            full_vmem(w2_t), full_vmem(b2_c),
            full_vmem(w3_c),
            pl.BlockSpec(memory_space=pltpu.MemorySpace.SMEM),   # b3 scalar
        ],
        out_specs=pl.BlockSpec((1, tm), lambda i: (0, i)),
        compiler_params=pltpu.CompilerParams(
            dimension_semantics=("parallel",)),
    )(x_t, w1_c, b1_c, w2_t, b2_c, w3_c, b3_s)

    # (1, B) -> (B, 1) is a free reorder for a single row/column.
    return out_t.reshape(B, 1)


def init_params(key, n_input, n_hidden, n_output):
    """Deterministic init mimicking PyTorch nn.Linear default:
    U(-1/sqrt(fan_in), 1/sqrt(fan_in)) for both weight and bias.
    Weights are stored as (in_features, out_features) so y = x @ W + b."""
    def linear(k, fan_in, fan_out):
        kw, kb = jax.random.split(k)
        bound = 1.0 / jnp.sqrt(jnp.float32(fan_in))
        w = jax.random.uniform(kw, (fan_in, fan_out), jnp.float32, -bound, bound)
        b = jax.random.uniform(kb, (1, fan_out), jnp.float32, -bound, bound)
        return w, b

    k1, k2, k3 = jax.random.split(key, 3)
    w1, b1 = linear(k1, n_input, n_hidden)
    w2, b2 = linear(k2, n_hidden, n_hidden)
    w3, b3 = linear(k3, n_hidden, n_output)
    return w1, b1, w2, b2, w3, b3


if __name__ == "__main__":
    n_input, n_hidden, n_output = 1, 32, 1

    key = jax.random.PRNGKey(0)
    params = init_params(key, n_input, n_hidden, n_output)

    # Mirror the script's input: x = linspace(-1, 1, 100).unsqueeze(1) -> (100, 1)
    x = jnp.expand_dims(jnp.linspace(-1.0, 1.0, 100, dtype=jnp.float32), axis=1)

    out = jax.block_until_ready(regression_forward(x, *params))

    # Reference check in plain JAX (same math, untransposed layout).
    w1, b1, w2, b2, w3, b3 = params
    ref = jnp.maximum(x @ w1 + b1, 0.0)
    ref = jnp.maximum(ref @ w2 + b2, 0.0)
    ref = ref @ w3 + b3
    assert out.shape == (100, n_output)
    assert jnp.allclose(out, ref, atol=1e-5, rtol=1e-5)

    print("KERNEL_OK")
</pallas_src>

<mosaic_0001>
module attributes {stable_mosaic.version = 11 : i64} {
  func.func @_mlp_kernel(%arg0: i32, %arg1: memref<1x128xf32, #tpu.memory_space<vmem>>, %arg2: memref<32x1xf32, #tpu.memory_space<vmem>>, %arg3: memref<32x1xf32, #tpu.memory_space<vmem>>, %arg4: memref<32x32xf32, #tpu.memory_space<vmem>>, %arg5: memref<32x1xf32, #tpu.memory_space<vmem>>, %arg6: memref<32x1xf32, #tpu.memory_space<vmem>>, %arg7: memref<1xf32, #tpu.memory_space<smem>>, %arg8: memref<1x128xf32, #tpu.memory_space<vmem>>) attributes {dimension_semantics = [#tpu.dimension_semantics<parallel>], iteration_bounds = array<i64: 1>, scalar_prefetch = 0 : i64, scratch_operands = 0 : i64, tpu.core_type = #tpu.core_type<tc>, window_params = [{transform_indices = @transform_0, window_bounds = array<i64: 1, 128>}, {pipeline_mode = #tpu.pipeline_mode<synchronous>, transform_indices = @transform_1, window_bounds = array<i64: 32, 1>}, {pipeline_mode = #tpu.pipeline_mode<synchronous>, transform_indices = @transform_2, window_bounds = array<i64: 32, 1>}, {pipeline_mode = #tpu.pipeline_mode<synchronous>, transform_indices = @transform_3, window_bounds = array<i64: 32, 32>}, {pipeline_mode = #tpu.pipeline_mode<synchronous>, transform_indices = @transform_4, window_bounds = array<i64: 32, 1>}, {pipeline_mode = #tpu.pipeline_mode<synchronous>, transform_indices = @transform_5, window_bounds = array<i64: 32, 1>}, {transform_indices = @transform_6, window_bounds = array<i64: 1>}, {transform_indices = @transform_7, window_bounds = array<i64: 1, 128>}]} {
    %c0 = arith.constant 0 : index
    %c0_0 = arith.constant 0 : index
    %0 = vector.load %arg1[%c0, %c0_0] : memref<1x128xf32, #tpu.memory_space<vmem>>, vector<1x128xf32>
    %c0_1 = arith.constant 0 : index
    %c0_2 = arith.constant 0 : index
    %1 = vector.load %arg2[%c0_1, %c0_2] : memref<32x1xf32, #tpu.memory_space<vmem>>, vector<32x1xf32>
    %2 = vector.broadcast %1 : vector<32x1xf32> to vector<32x128xf32>
    %3 = vector.broadcast %0 : vector<1x128xf32> to vector<32x128xf32>
    %4 = arith.mulf %2, %3 : vector<32x128xf32>
    %c0_3 = arith.constant 0 : index
    %c0_4 = arith.constant 0 : index
    %5 = vector.load %arg3[%c0_3, %c0_4] : memref<32x1xf32, #tpu.memory_space<vmem>>, vector<32x1xf32>
    %6 = vector.broadcast %5 : vector<32x1xf32> to vector<32x128xf32>
    %7 = arith.addf %4, %6 : vector<32x128xf32>
    %cst = arith.constant 0.000000e+00 : f32
    %8 = vector.broadcast %cst : f32 to vector<32x128xf32>
    %9 = arith.maximumf %7, %8 : vector<32x128xf32>
    %c0_5 = arith.constant 0 : index
    %c0_6 = arith.constant 0 : index
    %10 = vector.load %arg4[%c0_5, %c0_6] : memref<32x32xf32, #tpu.memory_space<vmem>>, vector<32x32xf32>
    %cst_7 = arith.constant dense<0.000000e+00> : vector<32x128xf32>
    %11 = tpu.matmul %10, %9, %cst_7 {dimension_numbers = #tpu.dot_dimension_numbers<[1], [0], [0], [1], [0, 0, 1, 1], [], []>} : vector<32x32xf32>, vector<32x128xf32>, vector<32x128xf32> -> vector<32x128xf32>
    %c0_8 = arith.constant 0 : index
    %c0_9 = arith.constant 0 : index
    %12 = vector.load %arg5[%c0_8, %c0_9] : memref<32x1xf32, #tpu.memory_space<vmem>>, vector<32x1xf32>
    %13 = vector.broadcast %12 : vector<32x1xf32> to vector<32x128xf32>
    %14 = arith.addf %11, %13 : vector<32x128xf32>
    %cst_10 = arith.constant 0.000000e+00 : f32
    %15 = vector.broadcast %cst_10 : f32 to vector<32x128xf32>
    %16 = arith.maximumf %14, %15 : vector<32x128xf32>
    %c0_11 = arith.constant 0 : index
    %c0_12 = arith.constant 0 : index
    %17 = vector.load %arg6[%c0_11, %c0_12] : memref<32x1xf32, #tpu.memory_space<vmem>>, vector<32x1xf32>
    %18 = vector.broadcast %17 : vector<32x1xf32> to vector<32x128xf32>
    %19 = arith.mulf %18, %16 : vector<32x128xf32>
    %cst_13 = arith.constant dense<0.000000e+00> : vector<128xf32>
    %20 = vector.multi_reduction <add>, %19, %cst_13 [0] : vector<32x128xf32> to vector<128xf32>
    %21 = vector.shape_cast %20 : vector<128xf32> to vector<1x128xf32>
    %c0_14 = arith.constant 0 : index
    %22 = memref.load %arg7[%c0_14] : memref<1xf32, #tpu.memory_space<smem>>
    %23 = vector.broadcast %22 : f32 to vector<1x128xf32>
    %24 = arith.addf %21, %23 : vector<1x128xf32>
    %c0_15 = arith.constant 0 : index
    %c0_16 = arith.constant 0 : index
    %25 = vector.load %arg8[%c0_15, %c0_16] : memref<1x128xf32, #tpu.memory_space<vmem>>, vector<1x128xf32>
    tpu.vector_store %arg8[%c0_15, %c0_16], %24 {strides = array<i32>} : memref<1x128xf32, #tpu.memory_space<vmem>>, vector<1x128xf32>,
    return
  }
  func.func @transform_0(%arg0: i32) -> (i32, i32) {
    %c0_i32 = arith.constant 0 : i32
    %c0_i32_0 = arith.constant 0 : i32
    return %c0_i32, %arg0 : i32, i32
  }
  func.func @transform_1(%arg0: i32) -> (i32, i32) {
    %c0_i32 = arith.constant 0 : i32
    %c0_i32_0 = arith.constant 0 : i32
    %c0_i32_1 = arith.constant 0 : i32
    return %c0_i32, %c0_i32_0 : i32, i32
  }
  func.func @transform_2(%arg0: i32) -> (i32, i32) {
    %c0_i32 = arith.constant 0 : i32
    %c0_i32_0 = arith.constant 0 : i32
    %c0_i32_1 = arith.constant 0 : i32
    return %c0_i32, %c0_i32_0 : i32, i32
  }
  func.func @transform_3(%arg0: i32) -> (i32, i32) {
    %c0_i32 = arith.constant 0 : i32
    %c0_i32_0 = arith.constant 0 : i32
    %c0_i32_1 = arith.constant 0 : i32
    return %c0_i32, %c0_i32_0 : i32, i32
  }
  func.func @transform_4(%arg0: i32) -> (i32, i32) {
    %c0_i32 = arith.constant 0 : i32
    %c0_i32_0 = arith.constant 0 : i32
    %c0_i32_1 = arith.constant 0 : i32
    return %c0_i32, %c0_i32_0 : i32, i32
  }
  func.func @transform_5(%arg0: i32) -> (i32, i32) {
    %c0_i32 = arith.constant 0 : i32
    %c0_i32_0 = arith.constant 0 : i32
    %c0_i32_1 = arith.constant 0 : i32
    return %c0_i32, %c0_i32_0 : i32, i32
  }
  func.func @transform_6(%arg0: i32) -> i32 {
    %c0_i32 = arith.constant 0 : i32
    %c0_i32_0 = arith.constant 0 : i32
    return %c0_i32 : i32
  }
  func.func @transform_7(%arg0: i32) -> (i32, i32) {
    %c0_i32 = arith.constant 0 : i32
    %c0_i32_0 = arith.constant 0 : i32
    return %c0_i32, %arg0 : i32, i32
  }
}

</mosaic_0001>

<bundles_post_ra>
// kernel: tpu_custom_call.1
= control target key start
LH: loop header
LB: loop body
LE: loop exit
PB: predicated region body
PF: predicated region fallthrough
CT: control target
= control target key end

     0   :  { %v347_v2 = vmov 0   ;;  %s471_s0 = inlined_call_operand.vmem [shape: f32[1,100], index: 0, kind: input, shape index: {}]   ;;  %s472_s1 = inlined_call_operand.vmem [shape: f32[32,1], index: 1, kind: input, shape index: {}]   ;;  %s473_s2 = inlined_call_operand.vmem [shape: f32[32,1], index: 2, kind: input, shape index: {}]   ;;  %s474_s3 = inlined_call_operand.vmem [shape: f32[32,32], index: 3, kind: input, shape index: {}]   ;;  %s475_s4 = inlined_call_operand.vmem [shape: f32[32,1], index: 4, kind: input, shape index: {}]   ;;  %s476_s5 = inlined_call_operand.vmem [shape: f32[32,1], index: 5, kind: input, shape index: {}]   ;;  %s477_s6 = inlined_call_operand.<no memory space> [shape: f32[1], index: 6, kind: input, shape index: {}]   ;;  %s478_s7 = inlined_call_operand.hbm [shape: f32[1,100], index: 7, kind: output, shape index: {}]  }
   0x1   :  { %v63_v0 = vld [vmem:[%s473_s2] sm:$0xff]  ;;  %322 = vset.pattern.permute.xlu1 %v347_v2  ;;  %321 = vset.pattern.permute.xlu0 %v347_v2  ;;  %v64_v3 = vld [vmem:[%s473_s2 + $0x8] sm:$0xff] }
   0x2   :  { %v29_v1 = vld [vmem:[%s472_s1] sm:$0xff]  ;;  %69 = vperm.xlu1 %322, %v63_v0   ;;  %v30_v4 = vld [vmem:[%s472_s1 + $0x8] sm:$0xff] }
   0x3   :  { %35 = vperm.xlu0 %321, %v29_v1  }
   0x4   :  { %13 = vsyncpa [#allocation4], 0  ;;  %v32_v5 = vld [vmem:[%s472_s1 + $0x18] sm:$0xff]  ;;  %v31_v6 = vld [vmem:[%s472_s1 + $0x10] sm:$0xff]  ;;  %vm123_vm0 = vcmask 261120   ;;  %s348_s16 = smov [#allocation3]  }
   0x5   :  { %v66_v7 = vld [vmem:[%s473_s2 + $0x18] sm:$0xff]  ;;  %v65_v8 = vld [vmem:[%s473_s2 + $0x10] sm:$0xff]  ;;  %v100_v9 = vld [vmem:[%s475_s4 + $0x8] sm:$0xff]  ;;  %s272_s17 = sshll.u32 %s348_s16, 4  ;;  %s273_s17 = int_to_ptr.vmem [resolvable:$true] %s272_s17 }
   0x6   :  { %74 = vperm.xlu1 %322, %v64_v3   ;;  %v99_v10 = vld [vmem:[%s475_s4] sm:$0xff]  ;;  %v102_v11 = vld [vmem:[%s475_s4 + $0x18] sm:$0xff]  ;;  %v101_v12 = vld [vmem:[%s475_s4 + $0x10] sm:$0xff]  ;;  %s323_s18 = scalar_lea.vmem %s273_s17, 16  ;;  %s327_s19 = scalar_lea.vmem %s273_s17, 32 }
   0x7   :  { %40 = vperm.xlu0 %321, %v30_v4   ;;  %v95_v13 = vld [vmem:[%s474_s3] sm:$0xff]  ;;  %v97_v14 = vld [vmem:[%s474_s3 + $0x10] sm:$0xff]  ;;  %v226_v15 = vld [vmem:[%s476_s5 + $0x8] sm:$0xff]  ;;  %p324_p0 = scmp.ne.s32.totalorder %s273_s17, %s323_s18  ;;  %p328_p1 = scmp.lt.s32.totalorder %s273_s17, %s273_s17 }
   0x8   :  { %v225_v16 = vld [vmem:[%s476_s5] sm:$0xff]  ;;  %301 = vmatprep.mubr.msk.f32.mxu0 %vm123_vm0, %v95_v13  ;;  %304 = vmatprep.mubr.msk.f32.mxu1 %vm123_vm0, %v97_v14  ;;  %v228_v17 = vld [vmem:[%s476_s5 + $0x18] sm:$0xff]  ;;  %v227_v18 = vld [vmem:[%s476_s5 + $0x10] sm:$0xff]  ;;  %p329_p2 = scmp.lt.s32.totalorder %s327_s19, %s323_s18 }
   0x9   :  { %v280_v19 = vld [vmem:[%s471_s0] ss:$0 sm:$0xff]  ;;  %v96_v42 = vld [vmem:[%s474_s3 + $0x8] sm:$0xff]  ;;  %v98_v43 = vld [vmem:[%s474_s3 + $0x18] sm:$0xff] }
   0xa   :  { %50 = vperm.xlu1 %322, %v32_v5   ;;  %p330_p3 = por %p329_p2, %p328_p1 }
   0xb   :  { %45 = vperm.xlu0 %321, %v31_v6  }
   0xc   :  { %p331_p4 = pnand %p330_p3, %p324_p0 }
   0xe   :  { %84 = vperm.xlu1 %322, %v66_v7  }
   0xf   :  { %79 = vperm.xlu0 %321, %v65_v8  }
  0x12   :  { %110 = vperm.xlu1 %322, %v100_v9  }
  0x13   :  { %105 = vperm.xlu0 %321, %v99_v10  }
  0x16   :  { %120 = vperm.xlu1 %322, %v102_v11  }
  0x17   :  { %115 = vperm.xlu0 %321, %v101_v12   ;;  %v263_v12 = vstv %s477_s6 }
  0x1a   :  { %236 = vperm.xlu1 %322, %v226_v15  }
  0x1b   :  { %231 = vperm.xlu0 %321, %v225_v16  }
  0x1e   :  { %246 = vperm.xlu1 %322, %v228_v17  }
  0x1f   :  { %241 = vperm.xlu0 %321, %v227_v18  }
  0x81   :  { %v70_v20 = vpop.permute.xlu1 %69 }
  0x82   :  { %v36_v21 = vpop.permute.xlu0 %35 }
  0x83   :  { %v59_v22 = vmul.f32 %v280_v19, %v36_v21 }
  0x85   :  { %v75_v23 = vpop.permute.xlu1 %74  ;;  %v87_v25 = vadd.f32 %v70_v20, %v59_v22 }
  0x86   :  { %v41_v24 = vpop.permute.xlu0 %40 }
  0x87   :  { %v60_v26 = vmul.f32 %v280_v19, %v41_v24  ;;  %v91_v30 = vmax.f32 %v87_v25, 0.0 }
  0x89   :  { %v88_v27 = vadd.f32 %v75_v23, %v60_v26  ;;  %v51_v28 = vpop.permute.xlu1 %50 }
  0x8a   :  { %v46_v29 = vpop.permute.xlu0 %45  ;;  %v62_v33 = vmul.f32 %v280_v19, %v51_v28 }
  0x8b   :  { %v92_v31 = vmax.f32 %v88_v27, 0.0  ;;  %v61_v34 = vmul.f32 %v280_v19, %v46_v29 }
  0x8d   :  { %v307_v32 = vpack.c.bf16 %v92_v31, %v91_v30  ;;  %v85_v35 = vpop.permute.xlu1 %84 }
  0x8e   :  { %v80_v36 = vpop.permute.xlu0 %79  ;;  %v90_v37 = vadd.f32 %v85_v35, %v62_v33 }
  0x8f   :  { %v89_v38 = vadd.f32 %v80_v36, %v61_v34  ;;  %308 = vmatprep.subr.bf16.mxu0 %v307_v32  ;;  %315 = vmatprep.subr.bf16.mxu1 %v307_v32 }
  0x90   :  { %310 = vmatpush3.bf16.msra.mxu0 %v307_v32  ;;  %317 = vmatpush3.bf16.msra.mxu1 %v307_v32  ;;  %v94_v39 = vmax.f32 %v90_v37, 0.0 }
  0x91   :  { %v93_v40 = vmax.f32 %v89_v38, 0.0  ;;  %v111_v45 = vpop.permute.xlu1 %110 }
  0x92   :  { %v106_v44 = vpop.permute.xlu0 %105 }
  0x93   :  { %v311_v41 = vpack.c.bf16 %v94_v39, %v93_v40 }
  0x95   :  { %312 = vmatprep.subr.bf16.mxu0 %v311_v41  ;;  %316 = vmatprep.subr.bf16.mxu1 %v311_v41  ;;  %v121_v47 = vpop.permute.xlu1 %120 }
  0x96   :  { %314 = vmatpush3.bf16.msra.mxu0 %v311_v41  ;;  %318 = vmatpush3.bf16.msra.mxu1 %v311_v41  ;;  %v116_v46 = vpop.permute.xlu0 %115 }
  0x99   :  { %302 = vmatmul.mubr.msk.f32.vlgmr.msra.gmra.mrb[0].mxu0 %vm123_vm0, %v96_v42  ;;  %305 = vmatmul.mubr.msk.f32.vlgmr.msra.gmra.mrb[0].mxu1 %vm123_vm0, %v98_v43  ;;  %v237_v57 = vpop.permute.xlu1 %236 }
  0x9a   :  { %v232_v48 = vpop.permute.xlu0 %231 }
  0x9d   :  { %v247_v3 = vpop.permute.xlu1 %246 }
  0x9e   :  { %v242_v0 = vpop.permute.xlu0 %241 }
 0x16c   :  { %v303_v49 = vpop.f32.mrb[0].mxu0  ;;  %v306_v50 = vpop.f32.mrb[0].mxu1 }
 0x16d   :  { %v208_v51 = vadd.f32 %v303_v49, %v111_v45  ;;  %v202_v52 = vpop.f32.mrb[1].mxu0  ;;  %v212_v53 = vpop.f32.mrb[1].mxu1  ;;  %v218_v54 = vadd.f32 %v306_v50, %v121_v47 }
 0x16e   :  { %v203_v55 = vadd.f32 %v202_v52, %v106_v44  ;;  %v213_v56 = vadd.f32 %v212_v53, %v116_v46 }
 0x16f   :  { %v222_v58 = vmax.f32 %v208_v51, 0.0  ;;  %v224_v62 = vmax.f32 %v218_v54, 0.0 }
 0x170   :  { %v221_v59 = vmax.f32 %v203_v55, 0.0  ;;  %v223_v60 = vmax.f32 %v213_v56, 0.0 }
 0x171   :  { %v250_v61 = vmul.f32 %v237_v57, %v222_v58  ;;  %v252_v4 = vmul.f32 %v247_v3, %v224_v62 }
 0x172   :  { %v249_v63 = vmul.f32 %v232_v48, %v221_v59  ;;  %v251_v2 = vmul.f32 %v242_v0, %v223_v60 }
 0x174   :  { %v253_v1 = vadd.f32 %v250_v61, %v249_v63 }
 0x176   :  { %v254_v5 = vadd.f32 %v253_v1, %v251_v2 }
 0x178   :  { %v255_v6 = vadd.f32 %v254_v5, %v252_v4 }
 0x17a   :  { %v256_v7 = vrot.slane %v255_v6, 4 }
 0x17c   :  { %v257_v8 = vadd.f32 %v256_v7, %v255_v6 }
 0x17e   :  { %v258_v9 = vrot.slane %v257_v8, 2 }
 0x180   :  { %v259_v10 = vadd.f32 %v258_v9, %v257_v8 }
 0x182   :  { %v260_v11 = vrot.slane %v259_v10, 1 }
 0x184   :  { %v261_v13 = vadd.f32 %v260_v11, %v259_v10 }
 0x186   :  { %v264_v14 = vadd.f32 %v263_v12, %v261_v13 }
 0x188   :  { %265 = vst [vmem:[#allocation3] sm:$0x1] %v264_v14 }
 0x189   :  { %334 = shalt.err (!%p331_p4)
}
 0x18a   :  { %s335_s21 = scalar_lea.hbm %s478_s7, 16 }
 0x18b   :  { %p336_p5 = scmp.ne.s32.totalorder %s478_s7, %s335_s21  ;;  %p339_p6 = scmp.lt.u32.totalorder %s335_s21, %s478_s7 }
 0x18d   :  { %p341_p7 = pnand %p339_p6, %p336_p5 }
 0x18f   :  { %344 = shalt.err (!%p341_p7)
}
 0x190   :  { %275 = dma.vmem_to_hbm [thread:$0]  %s273_s17, 16, %s478_s7, [#allocation4]  }
 0x191   :  { %345 = dma.done.wait [#allocation4], 16  }
 0x192   :  { %346 = vsyncadd [#allocation4], 4294967280 }
 0x193   :  { %279 = vsyncpa [#allocation4], 1 }

</bundles_post_ra>
